<compile_context>
chip_gen: v5e
topology: v5e:2x2
jax: 0.10.0
libtpu: 0.0.40
codegen_flags: <defaults>
</compile_context>

<pallas_src>
import functools

import jax
import jax.numpy as jnp
from jax import lax
from jax.experimental import pallas as pl
from jax.experimental.pallas import tpu as pltpu


def lstm_kernel(preact_ref, whh_ref, wfc_ref, bfc_ref, y_ref, *,
                seq_len, hidden_dim):
    """Runs the full LSTM recurrence + fc head in one kernel invocation.

    preact_ref: (S, B, 4H) f32  hoisted gate pre-activations x_t@W_ih + b_ih + b_hh
    whh_ref:    (H, 4H)    f32  recurrent weights (transposed vs. PyTorch)
    wfc_ref:    (H, O)     f32  fc head weights (transposed vs. PyTorch)
    bfc_ref:    (1, O)     f32  fc bias
    y_ref:      (B, O)     f32  output logits
    """
    H = hidden_dim
    B = preact_ref.shape[1]

    # Load recurrent weights once; resident for all S steps.
    whh = whh_ref[...]

    def step(t, carry):
        h, c = carry
        # Only the recurrent matmul stays inside the sequential loop; the
        # input projection + bias were hoisted into `preact`.
        gates = preact_ref[t] + jnp.dot(h, whh,
                                        preferred_element_type=jnp.float32)
        # PyTorch gate order [i, f, g, o].
        i_g = jax.nn.sigmoid(gates[:, 0 * H:1 * H])
        f_g = jax.nn.sigmoid(gates[:, 1 * H:2 * H])
        g_g = jnp.tanh(gates[:, 2 * H:3 * H])
        o_g = jax.nn.sigmoid(gates[:, 3 * H:4 * H])
        c_new = f_g * c + i_g * g_g
        h_new = o_g * jnp.tanh(c_new)
        return (h_new, c_new)

    h0 = jnp.zeros((B, H), jnp.float32)
    c0 = jnp.zeros((B, H), jnp.float32)
    # Fully unrolled (S is small and static) -> scheduler visibility across steps.
    h_final, _ = lax.fori_loop(0, seq_len, step, (h0, c0), unroll=True)

    # fc head: one matmul + bias, single store.
    y_ref[...] = (jnp.dot(h_final, wfc_ref[...],
                          preferred_element_type=jnp.float32)
                  + bfc_ref[...]).astype(y_ref.dtype)


def lstm_forward(tokens, emb_table, w_ih, w_hh, b_lstm, w_fc, b_fc):
    """tokens: int32 (batch, seq).  Returns (batch, output_dim) float32."""
    B, S = tokens.shape
    H = w_hh.shape[0]
    O = w_fc.shape[1]

    # Embedding gather + hoisted input projection for ALL timesteps as one
    # well-shaped matmul (cuDNN-style LSTM split), emitted time-major so the
    # kernel never touches W_ih or the embeddings.  XLA fuses gather+matmul;
    # the bias broadcast happens exactly once here.
    x_emb = jnp.take(emb_table, tokens, axis=0)            # (B, S, E)
    preact = jnp.einsum('bse,eg->sbg', x_emb, w_ih) + b_lstm  # (S, B, 4H)

    kernel = functools.partial(lstm_kernel, seq_len=S, hidden_dim=H)

    vmem = lambda: pl.BlockSpec(memory_space=pltpu.MemorySpace.VMEM)
    y = pl.pallas_call(
        kernel,
        out_shape=jax.ShapeDtypeStruct((B, O), jnp.float32),
        in_specs=[vmem(), vmem(), vmem(), vmem()],
        out_specs=vmem(),
    )(preact, w_hh, w_fc, b_fc)
    return y


def reference_forward(tokens, emb_table, w_ih, w_hh, b_lstm, w_fc, b_fc):
    """Pure-JAX reference of the same math (for sanity check)."""
    x_emb = jnp.transpose(jnp.take(emb_table, tokens, axis=0), (1, 0, 2))
    B = tokens.shape[0]
    H = w_hh.shape[0]

    def step(carry, x_t):
        h, c = carry
        gates = x_t @ w_ih + h @ w_hh + b_lstm[0]
        i = jax.nn.sigmoid(gates[:, 0 * H:1 * H])
        f = jax.nn.sigmoid(gates[:, 1 * H:2 * H])
        g = jnp.tanh(gates[:, 2 * H:3 * H])
        o = jax.nn.sigmoid(gates[:, 3 * H:4 * H])
        c = f * c + i * g
        h = o * jnp.tanh(c)
        return (h, c), None

    h0 = jnp.zeros((B, H), jnp.float32)
    (h, _), _ = jax.lax.scan(step, (h0, h0), x_emb)
    return h @ w_fc + b_fc[0]


if __name__ == "__main__":
    # Small shapes consistent with the module's forward.
    batch_size = 2
    seq_len = 8
    emb_dim = 32
    hidden_dim = 32
    output_dim = 4
    max_vocab_size = 100

    key = jax.random.PRNGKey(0)
    k_tok, k_emb, k_wih, k_whh, k_bih, k_bhh, k_wfc, k_bfc = jax.random.split(key, 8)

    tokens = jax.random.randint(k_tok, (batch_size, seq_len), 0, max_vocab_size,
                                dtype=jnp.int32)

    emb_table = jax.random.normal(k_emb, (max_vocab_size, emb_dim), jnp.float32)

    scale = 1.0 / jnp.sqrt(hidden_dim)
    # Stored pre-transposed relative to PyTorch: (in_features, 4*hidden).
    w_ih = jax.random.uniform(k_wih, (emb_dim, 4 * hidden_dim), jnp.float32,
                              -scale, scale)
    w_hh = jax.random.uniform(k_whh, (hidden_dim, 4 * hidden_dim), jnp.float32,
                              -scale, scale)
    b_ih = jax.random.uniform(k_bih, (4 * hidden_dim,), jnp.float32, -scale, scale)
    b_hh = jax.random.uniform(k_bhh, (4 * hidden_dim,), jnp.float32, -scale, scale)
    b_lstm = (b_ih + b_hh).reshape(1, 4 * hidden_dim)

    w_fc = jax.random.uniform(k_wfc, (hidden_dim, output_dim), jnp.float32,
                              -scale, scale)
    b_fc = jax.random.uniform(k_bfc, (output_dim,), jnp.float32,
                              -scale, scale).reshape(1, output_dim)

    y = lstm_forward(tokens, emb_table, w_ih, w_hh, b_lstm, w_fc, b_fc)
    y = jax.block_until_ready(y)

    y_ref = reference_forward(tokens, emb_table, w_ih, w_hh, b_lstm, w_fc, b_fc)
    assert y.shape == (batch_size, output_dim)
    assert jnp.allclose(y, y_ref, atol=1e-4, rtol=1e-4)

    print("KERNEL_OK")
</pallas_src>

<mosaic_0001>
module attributes {stable_mosaic.version = 11 : i64} {
  func.func @lstm_kernel(%arg0: memref<8x2x128xf32, #tpu.memory_space<vmem>>, %arg1: memref<32x128xf32, #tpu.memory_space<vmem>>, %arg2: memref<32x4xf32, #tpu.memory_space<vmem>>, %arg3: memref<1x4xf32, #tpu.memory_space<vmem>>, %arg4: memref<2x4xf32, #tpu.memory_space<vmem>>) attributes {dimension_semantics = [], scalar_prefetch = 0 : i64, scratch_operands = 0 : i64, tpu.core_type = #tpu.core_type<tc>} {
    %c0 = arith.constant 0 : index
    %c0_0 = arith.constant 0 : index
    %0 = vector.load %arg1[%c0, %c0_0] : memref<32x128xf32, #tpu.memory_space<vmem>>, vector<32x128xf32>
    %cst = arith.constant 0.000000e+00 : f32
    %1 = vector.broadcast %cst : f32 to vector<2x32xf32>
    %cst_1 = arith.constant 0.000000e+00 : f32
    %2 = vector.broadcast %cst_1 : f32 to vector<2x32xf32>
    %c0_i32 = arith.constant 0 : i32
    %3 = arith.index_cast %c0_i32 : i32 to index
    %c0_2 = arith.constant 0 : index
    %c0_3 = arith.constant 0 : index
    %4 = vector.load %arg0[%3, %c0_2, %c0_3] : memref<8x2x128xf32, #tpu.memory_space<vmem>>, vector<1x2x128xf32>
    %5 = vector.shape_cast %4 : vector<1x2x128xf32> to vector<2x128xf32>
    %cst_4 = arith.constant dense<0.000000e+00> : vector<2x128xf32>
    %6 = tpu.matmul %1, %0, %cst_4 {dimension_numbers = #tpu.dot_dimension_numbers<[1], [0], [0], [1], [0, 0, 1, 1], [], []>} : vector<2x32xf32>, vector<32x128xf32>, vector<2x128xf32> -> vector<2x128xf32>
    %7 = arith.addf %5, %6 : vector<2x128xf32>
    %8 = vector.extract_strided_slice %7 {offsets = [0, 0], sizes = [2, 32], strides = [1, 1]} : vector<2x128xf32> to vector<2x32xf32>
    %9 = arith.negf %8 : vector<2x32xf32>
    %10 = math.exp %9 : vector<2x32xf32>
    %cst_5 = arith.constant 1.000000e+00 : f32
    %11 = vector.broadcast %cst_5 : f32 to vector<2x32xf32>
    %12 = arith.addf %11, %10 : vector<2x32xf32>
    %13 = arith.divf %11, %12 : vector<2x32xf32>
    %14 = vector.extract_strided_slice %7 {offsets = [0, 32], sizes = [2, 32], strides = [1, 1]} : vector<2x128xf32> to vector<2x32xf32>
    %15 = arith.negf %14 : vector<2x32xf32>
    %16 = math.exp %15 : vector<2x32xf32>
    %cst_6 = arith.constant 1.000000e+00 : f32
    %17 = vector.broadcast %cst_6 : f32 to vector<2x32xf32>
    %18 = arith.addf %17, %16 : vector<2x32xf32>
    %19 = arith.divf %17, %18 : vector<2x32xf32>
    %20 = vector.extract_strided_slice %7 {offsets = [0, 64], sizes = [2, 32], strides = [1, 1]} : vector<2x128xf32> to vector<2x32xf32>
    %21 = math.tanh %20 : vector<2x32xf32>
    %22 = vector.extract_strided_slice %7 {offsets = [0, 96], sizes = [2, 32], strides = [1, 1]} : vector<2x128xf32> to vector<2x32xf32>
    %23 = arith.negf %22 : vector<2x32xf32>
    %24 = math.exp %23 : vector<2x32xf32>
    %cst_7 = arith.constant 1.000000e+00 : f32
    %25 = vector.broadcast %cst_7 : f32 to vector<2x32xf32>
    %26 = arith.addf %25, %24 : vector<2x32xf32>
    %27 = arith.divf %25, %26 : vector<2x32xf32>
    %28 = arith.mulf %19, %2 : vector<2x32xf32>
    %29 = arith.mulf %13, %21 : vector<2x32xf32>
    %30 = arith.addf %28, %29 : vector<2x32xf32>
    %31 = math.tanh %30 : vector<2x32xf32>
    %32 = arith.mulf %27, %31 : vector<2x32xf32>
    %c1_i32 = arith.constant 1 : i32
    %33 = arith.index_cast %c1_i32 : i32 to index
    %c0_8 = arith.constant 0 : index
    %c0_9 = arith.constant 0 : index
    %34 = vector.load %arg0[%33, %c0_8, %c0_9] : memref<8x2x128xf32, #tpu.memory_space<vmem>>, vector<1x2x128xf32>
    %35 = vector.shape_cast %34 : vector<1x2x128xf32> to vector<2x128xf32>
    %cst_10 = arith.constant dense<0.000000e+00> : vector<2x128xf32>
    %36 = tpu.matmul %32, %0, %cst_10 {dimension_numbers = #tpu.dot_dimension_numbers<[1], [0], [0], [1], [0, 0, 1, 1], [], []>} : vector<2x32xf32>, vector<32x128xf32>, vector<2x128xf32> -> vector<2x128xf32>
    %37 = arith.addf %35, %36 : vector<2x128xf32>
    %38 = vector.extract_strided_slice %37 {offsets = [0, 0], sizes = [2, 32], strides = [1, 1]} : vector<2x128xf32> to vector<2x32xf32>
    %39 = arith.negf %38 : vector<2x32xf32>
    %40 = math.exp %39 : vector<2x32xf32>
    %cst_11 = arith.constant 1.000000e+00 : f32
    %41 = vector.broadcast %cst_11 : f32 to vector<2x32xf32>
    %42 = arith.addf %41, %40 : vector<2x32xf32>
    %43 = arith.divf %41, %42 : vector<2x32xf32>
    %44 = vector.extract_strided_slice %37 {offsets = [0, 32], sizes = [2, 32], strides = [1, 1]} : vector<2x128xf32> to vector<2x32xf32>
    %45 = arith.negf %44 : vector<2x32xf32>
    %46 = math.exp %45 : vector<2x32xf32>
    %cst_12 = arith.constant 1.000000e+00 : f32
    %47 = vector.broadcast %cst_12 : f32 to vector<2x32xf32>
    %48 = arith.addf %47, %46 : vector<2x32xf32>
    %49 = arith.divf %47, %48 : vector<2x32xf32>
    %50 = vector.extract_strided_slice %37 {offsets = [0, 64], sizes = [2, 32], strides = [1, 1]} : vector<2x128xf32> to vector<2x32xf32>
    %51 = math.tanh %50 : vector<2x32xf32>
    %52 = vector.extract_strided_slice %37 {offsets = [0, 96], sizes = [2, 32], strides = [1, 1]} : vector<2x128xf32> to vector<2x32xf32>
    %53 = arith.negf %52 : vector<2x32xf32>
    %54 = math.exp %53 : vector<2x32xf32>
    %cst_13 = arith.constant 1.000000e+00 : f32
    %55 = vector.broadcast %cst_13 : f32 to vector<2x32xf32>
    %56 = arith.addf %55, %54 : vector<2x32xf32>
    %57 = arith.divf %55, %56 : vector<2x32xf32>
    %58 = arith.mulf %49, %30 : vector<2x32xf32>
    %59 = arith.mulf %43, %51 : vector<2x32xf32>
    %60 = arith.addf %58, %59 : vector<2x32xf32>
    %61 = math.tanh %60 : vector<2x32xf32>
    %62 = arith.mulf %57, %61 : vector<2x32xf32>
    %c2_i32 = arith.constant 2 : i32
    %63 = arith.index_cast %c2_i32 : i32 to index
    %c0_14 = arith.constant 0 : index
    %c0_15 = arith.constant 0 : index
    %64 = vector.load %arg0[%63, %c0_14, %c0_15] : memref<8x2x128xf32, #tpu.memory_space<vmem>>, vector<1x2x128xf32>
    %65 = vector.shape_cast %64 : vector<1x2x128xf32> to vector<2x128xf32>
    %cst_16 = arith.constant dense<0.000000e+00> : vector<2x128xf32>
    %66 = tpu.matmul %62, %0, %cst_16 {dimension_numbers = #tpu.dot_dimension_numbers<[1], [0], [0], [1], [0, 0, 1, 1], [], []>} : vector<2x32xf32>, vector<32x128xf32>, vector<2x128xf32> -> vector<2x128xf32>
    %67 = arith.addf %65, %66 : vector<2x128xf32>
    %68 = vector.extract_strided_slice %67 {offsets = [0, 0], sizes = [2, 32], strides = [1, 1]} : vector<2x128xf32> to vector<2x32xf32>
    %69 = arith.negf %68 : vector<2x32xf32>
    %70 = math.exp %69 : vector<2x32xf32>
    %cst_17 = arith.constant 1.000000e+00 : f32
    %71 = vector.broadcast %cst_17 : f32 to vector<2x32xf32>
    %72 = arith.addf %71, %70 : vector<2x32xf32>
    %73 = arith.divf %71, %72 : vector<2x32xf32>
    %74 = vector.extract_strided_slice %67 {offsets = [0, 32], sizes = [2, 32], strides = [1, 1]} : vector<2x128xf32> to vector<2x32xf32>
    %75 = arith.negf %74 : vector<2x32xf32>
    %76 = math.exp %75 : vector<2x32xf32>
    %cst_18 = arith.constant 1.000000e+00 : f32
    %77 = vector.broadcast %cst_18 : f32 to vector<2x32xf32>
    %78 = arith.addf %77, %76 : vector<2x32xf32>
    %79 = arith.divf %77, %78 : vector<2x32xf32>
    %80 = vector.extract_strided_slice %67 {offsets = [0, 64], sizes = [2, 32], strides = [1, 1]} : vector<2x128xf32> to vector<2x32xf32>
    %81 = math.tanh %80 : vector<2x32xf32>
    %82 = vector.extract_strided_slice %67 {offsets = [0, 96], sizes = [2, 32], strides = [1, 1]} : vector<2x128xf32> to vector<2x32xf32>
    %83 = arith.negf %82 : vector<2x32xf32>
    %84 = math.exp %83 : vector<2x32xf32>
    %cst_19 = arith.constant 1.000000e+00 : f32
    %85 = vector.broadcast %cst_19 : f32 to vector<2x32xf32>
    %86 = arith.addf %85, %84 : vector<2x32xf32>
    %87 = arith.divf %85, %86 : vector<2x32xf32>
    %88 = arith.mulf %79, %60 : vector<2x32xf32>
    %89 = arith.mulf %73, %81 : vector<2x32xf32>
    %90 = arith.addf %88, %89 : vector<2x32xf32>
    %91 = math.tanh %90 : vector<2x32xf32>
    %92 = arith.mulf %87, %91 : vector<2x32xf32>
    %c3_i32 = arith.constant 3 : i32
    %93 = arith.index_cast %c3_i32 : i32 to index
    %c0_20 = arith.constant 0 : index
    %c0_21 = arith.constant 0 : index
    %94 = vector.load %arg0[%93, %c0_20, %c0_21] : memref<8x2x128xf32, #tpu.memory_space<vmem>>, vector<1x2x128xf32>
    %95 = vector.shape_cast %94 : vector<1x2x128xf32> to vector<2x128xf32>
    %cst_22 = arith.constant dense<0.000000e+00> : vector<2x128xf32>
    %96 = tpu.matmul %92, %0, %cst_22 {dimension_numbers = #tpu.dot_dimension_numbers<[1], [0], [0], [1], [0, 0, 1, 1], [], []>} : vector<2x32xf32>, vector<32x128xf32>, vector<2x128xf32> -> vector<2x128xf32>
    %97 = arith.addf %95, %96 : vector<2x128xf32>
    %98 = vector.extract_strided_slice %97 {offsets = [0, 0], sizes = [2, 32], strides = [1, 1]} : vector<2x128xf32> to vector<2x32xf32>
    %99 = arith.negf %98 : vector<2x32xf32>
    %100 = math.exp %99 : vector<2x32xf32>
    %cst_23 = arith.constant 1.000000e+00 : f32
    %101 = vector.broadcast %cst_23 : f32 to vector<2x32xf32>
    %102 = arith.addf %101, %100 : vector<2x32xf32>
    %103 = arith.divf %101, %102 : vector<2x32xf32>
    %104 = vector.extract_strided_slice %97 {offsets = [0, 32], sizes = [2, 32], strides = [1, 1]} : vector<2x128xf32> to vector<2x32xf32>
    %105 = arith.negf %104 : vector<2x32xf32>
    %106 = math.exp %105 : vector<2x32xf32>
    %cst_24 = arith.constant 1.000000e+00 : f32
    %107 = vector.broadcast %cst_24 : f32 to vector<2x32xf32>
    %108 = arith.addf %107, %106 : vector<2x32xf32>
    %109 = arith.divf %107, %108 : vector<2x32xf32>
    %110 = vector.extract_strided_slice %97 {offsets = [0, 64], sizes = [2, 32], strides = [1, 1]} : vector<2x128xf32> to vector<2x32xf32>
    %111 = math.tanh %110 : vector<2x32xf32>
    %112 = vector.extract_strided_slice %97 {offsets = [0, 96], sizes = [2, 32], strides = [1, 1]} : vector<2x128xf32> to vector<2x32xf32>
    %113 = arith.negf %112 : vector<2x32xf32>
    %114 = math.exp %113 : vector<2x32xf32>
    %cst_25 = arith.constant 1.000000e+00 : f32
    %115 = vector.broadcast %cst_25 : f32 to vector<2x32xf32>
    %116 = arith.addf %115, %114 : vector<2x32xf32>
    %117 = arith.divf %115, %116 : vector<2x32xf32>
    %118 = arith.mulf %109, %90 : vector<2x32xf32>
    %119 = arith.mulf %103, %111 : vector<2x32xf32>
    %120 = arith.addf %118, %119 : vector<2x32xf32>
    %121 = math.tanh %120 : vector<2x32xf32>
    %122 = arith.mulf %117, %121 : vector<2x32xf32>
    %c4_i32 = arith.constant 4 : i32
    %123 = arith.index_cast %c4_i32 : i32 to index
    %c0_26 = arith.constant 0 : index
    %c0_27 = arith.constant 0 : index
    %124 = vector.load %arg0[%123, %c0_26, %c0_27] : memref<8x2x128xf32, #tpu.memory_space<vmem>>, vector<1x2x128xf32>
    %125 = vector.shape_cast %124 : vector<1x2x128xf32> to vector<2x128xf32>
    %cst_28 = arith.constant dense<0.000000e+00> : vector<2x128xf32>
    %126 = tpu.matmul %122, %0, %cst_28 {dimension_numbers = #tpu.dot_dimension_numbers<[1], [0], [0], [1], [0, 0, 1, 1], [], []>} : vector<2x32xf32>, vector<32x128xf32>, vector<2x128xf32> -> vector<2x128xf32>
    %127 = arith.addf %125, %126 : vector<2x128xf32>
    %128 = vector.extract_strided_slice %127 {offsets = [0, 0], sizes = [2, 32], strides = [1, 1]} : vector<2x128xf32> to vector<2x32xf32>
    %129 = arith.negf %128 : vector<2x32xf32>
    %130 = math.exp %129 : vector<2x32xf32>
    %cst_29 = arith.constant 1.000000e+00 : f32
    %131 = vector.broadcast %cst_29 : f32 to vector<2x32xf32>
    %132 = arith.addf %131, %130 : vector<2x32xf32>
    %133 = arith.divf %131, %132 : vector<2x32xf32>
    %134 = vector.extract_strided_slice %127 {offsets = [0, 32], sizes = [2, 32], strides = [1, 1]} : vector<2x128xf32> to vector<2x32xf32>
    %135 = arith.negf %134 : vector<2x32xf32>
    %136 = math.exp %135 : vector<2x32xf32>
    %cst_30 = arith.constant 1.000000e+00 : f32
    %137 = vector.broadcast %cst_30 : f32 to vector<2x32xf32>
    %138 = arith.addf %137, %136 : vector<2x32xf32>
    %139 = arith.divf %137, %138 : vector<2x32xf32>
    %140 = vector.extract_strided_slice %127 {offsets = [0, 64], sizes = [2, 32], strides = [1, 1]} : vector<2x128xf32> to vector<2x32xf32>
    %141 = math.tanh %140 : vector<2x32xf32>
    %142 = vector.extract_strided_slice %127 {offsets = [0, 96], sizes = [2, 32], strides = [1, 1]} : vector<2x128xf32> to vector<2x32xf32>
    %143 = arith.negf %142 : vector<2x32xf32>
    %144 = math.exp %143 : vector<2x32xf32>
    %cst_31 = arith.constant 1.000000e+00 : f32
    %145 = vector.broadcast %cst_31 : f32 to vector<2x32xf32>
    %146 = arith.addf %145, %144 : vector<2x32xf32>
    %147 = arith.divf %145, %146 : vector<2x32xf32>
    %148 = arith.mulf %139, %120 : vector<2x32xf32>
    %149 = arith.mulf %133, %141 : vector<2x32xf32>
    %150 = arith.addf %148, %149 : vector<2x32xf32>
    %151 = math.tanh %150 : vector<2x32xf32>
    %152 = arith.mulf %147, %151 : vector<2x32xf32>
    %c5_i32 = arith.constant 5 : i32
    %153 = arith.index_cast %c5_i32 : i32 to index
    %c0_32 = arith.constant 0 : index
    %c0_33 = arith.constant 0 : index
    %154 = vector.load %arg0[%153, %c0_32, %c0_33] : memref<8x2x128xf32, #tpu.memory_space<vmem>>, vector<1x2x128xf32>
    %155 = vector.shape_cast %154 : vector<1x2x128xf32> to vector<2x128xf32>
    %cst_34 = arith.constant dense<0.000000e+00> : vector<2x128xf32>
    %156 = tpu.matmul %152, %0, %cst_34 {dimension_numbers = #tpu.dot_dimension_numbers<[1], [0], [0], [1], [0, 0, 1, 1], [], []>} : vector<2x32xf32>, vector<32x128xf32>, vector<2x128xf32> -> vector<2x128xf32>
    %157 = arith.addf %155, %156 : vector<2x128xf32>
    %158 = vector.extract_strided_slice %157 {offsets = [0, 0], sizes = [2, 32], strides = [1, 1]} : vector<2x128xf32> to vector<2x32xf32>
    %159 = arith.negf %158 : vector<2x32xf32>
    %160 = math.exp %159 : vector<2x32xf32>
    %cst_35 = arith.constant 1.000000e+00 : f32
    %161 = vector.broadcast %cst_35 : f32 to vector<2x32xf32>
    %162 = arith.addf %161, %160 : vector<2x32xf32>
    %163 = arith.divf %161, %162 : vector<2x32xf32>
    %164 = vector.extract_strided_slice %157 {offsets = [0, 32], sizes = [2, 32], strides = [1, 1]} : vector<2x128xf32> to vector<2x32xf32>
    %165 = arith.negf %164 : vector<2x32xf32>
    %166 = math.exp %165 : vector<2x32xf32>
    %cst_36 = arith.constant 1.000000e+00 : f32
    %167 = vector.broadcast %cst_36 : f32 to vector<2x32xf32>
    %168 = arith.addf %167, %166 : vector<2x32xf32>
    %169 = arith.divf %167, %168 : vector<2x32xf32>
    %170 = vector.extract_strided_slice %157 {offsets = [0, 64], sizes = [2, 32], strides = [1, 1]} : vector<2x128xf32> to vector<2x32xf32>
    %171 = math.tanh %170 : vector<2x32xf32>
    %172 = vector.extract_strided_slice %157 {offsets = [0, 96], sizes = [2, 32], strides = [1, 1]} : vector<2x128xf32> to vector<2x32xf32>
    %173 = arith.negf %172 : vector<2x32xf32>
    %174 = math.exp %173 : vector<2x32xf32>
    %cst_37 = arith.constant 1.000000e+00 : f32
    %175 = vector.broadcast %cst_37 : f32 to vector<2x32xf32>
    %176 = arith.addf %175, %174 : vector<2x32xf32>
    %177 = arith.divf %175, %176 : vector<2x32xf32>
    %178 = arith.mulf %169, %150 : vector<2x32xf32>
    %179 = arith.mulf %163, %171 : vector<2x32xf32>
    %180 = arith.addf %178, %179 : vector<2x32xf32>
    %181 = math.tanh %180 : vector<2x32xf32>
    %182 = arith.mulf %177, %181 : vector<2x32xf32>
    %c6_i32 = arith.constant 6 : i32
    %183 = arith.index_cast %c6_i32 : i32 to index
    %c0_38 = arith.constant 0 : index
    %c0_39 = arith.constant 0 : index
    %184 = vector.load %arg0[%183, %c0_38, %c0_39] : memref<8x2x128xf32, #tpu.memory_space<vmem>>, vector<1x2x128xf32>
    %185 = vector.shape_cast %184 : vector<1x2x128xf32> to vector<2x128xf32>
    %cst_40 = arith.constant dense<0.000000e+00> : vector<2x128xf32>
    %186 = tpu.matmul %182, %0, %cst_40 {dimension_numbers = #tpu.dot_dimension_numbers<[1], [0], [0], [1], [0, 0, 1, 1], [], []>} : vector<2x32xf32>, vector<32x128xf32>, vector<2x128xf32> -> vector<2x128xf32>
    %187 = arith.addf %185, %186 : vector<2x128xf32>
    %188 = vector.extract_strided_slice %187 {offsets = [0, 0], sizes = [2, 32], strides = [1, 1]} : vector<2x128xf32> to vector<2x32xf32>
    %189 = arith.negf %188 : vector<2x32xf32>
    %190 = math.exp %189 : vector<2x32xf32>
    %cst_41 = arith.constant 1.000000e+00 : f32
    %191 = vector.broadcast %cst_41 : f32 to vector<2x32xf32>
    %192 = arith.addf %191, %190 : vector<2x32xf32>
    %193 = arith.divf %191, %192 : vector<2x32xf32>
    %194 = vector.extract_strided_slice %187 {offsets = [0, 32], sizes = [2, 32], strides = [1, 1]} : vector<2x128xf32> to vector<2x32xf32>
    %195 = arith.negf %194 : vector<2x32xf32>
    %196 = math.exp %195 : vector<2x32xf32>
    %cst_42 = arith.constant 1.000000e+00 : f32
    %197 = vector.broadcast %cst_42 : f32 to vector<2x32xf32>
    %198 = arith.addf %197, %196 : vector<2x32xf32>
    %199 = arith.divf %197, %198 : vector<2x32xf32>
    %200 = vector.extract_strided_slice %187 {offsets = [0, 64], sizes = [2, 32], strides = [1, 1]} : vector<2x128xf32> to vector<2x32xf32>
    %201 = math.tanh %200 : vector<2x32xf32>
    %202 = vector.extract_strided_slice %187 {offsets = [0, 96], sizes = [2, 32], strides = [1, 1]} : vector<2x128xf32> to vector<2x32xf32>
    %203 = arith.negf %202 : vector<2x32xf32>
    %204 = math.exp %203 : vector<2x32xf32>
    %cst_43 = arith.constant 1.000000e+00 : f32
    %205 = vector.broadcast %cst_43 : f32 to vector<2x32xf32>
    %206 = arith.addf %205, %204 : vector<2x32xf32>
    %207 = arith.divf %205, %206 : vector<2x32xf32>
    %208 = arith.mulf %199, %180 : vector<2x32xf32>
    %209 = arith.mulf %193, %201 : vector<2x32xf32>
    %210 = arith.addf %208, %209 : vector<2x32xf32>
    %211 = math.tanh %210 : vector<2x32xf32>
    %212 = arith.mulf %207, %211 : vector<2x32xf32>
    %c7_i32 = arith.constant 7 : i32
    %213 = arith.index_cast %c7_i32 : i32 to index
    %c0_44 = arith.constant 0 : index
    %c0_45 = arith.constant 0 : index
    %214 = vector.load %arg0[%213, %c0_44, %c0_45] : memref<8x2x128xf32, #tpu.memory_space<vmem>>, vector<1x2x128xf32>
    %215 = vector.shape_cast %214 : vector<1x2x128xf32> to vector<2x128xf32>
    %cst_46 = arith.constant dense<0.000000e+00> : vector<2x128xf32>
    %216 = tpu.matmul %212, %0, %cst_46 {dimension_numbers = #tpu.dot_dimension_numbers<[1], [0], [0], [1], [0, 0, 1, 1], [], []>} : vector<2x32xf32>, vector<32x128xf32>, vector<2x128xf32> -> vector<2x128xf32>
    %217 = arith.addf %215, %216 : vector<2x128xf32>
    %218 = vector.extract_strided_slice %217 {offsets = [0, 0], sizes = [2, 32], strides = [1, 1]} : vector<2x128xf32> to vector<2x32xf32>
    %219 = arith.negf %218 : vector<2x32xf32>
    %220 = math.exp %219 : vector<2x32xf32>
    %cst_47 = arith.constant 1.000000e+00 : f32
    %221 = vector.broadcast %cst_47 : f32 to vector<2x32xf32>
    %222 = arith.addf %221, %220 : vector<2x32xf32>
    %223 = arith.divf %221, %222 : vector<2x32xf32>
    %224 = vector.extract_strided_slice %217 {offsets = [0, 32], sizes = [2, 32], strides = [1, 1]} : vector<2x128xf32> to vector<2x32xf32>
    %225 = arith.negf %224 : vector<2x32xf32>
    %226 = math.exp %225 : vector<2x32xf32>
    %cst_48 = arith.constant 1.000000e+00 : f32
    %227 = vector.broadcast %cst_48 : f32 to vector<2x32xf32>
    %228 = arith.addf %227, %226 : vector<2x32xf32>
    %229 = arith.divf %227, %228 : vector<2x32xf32>
    %230 = vector.extract_strided_slice %217 {offsets = [0, 64], sizes = [2, 32], strides = [1, 1]} : vector<2x128xf32> to vector<2x32xf32>
    %231 = math.tanh %230 : vector<2x32xf32>
    %232 = vector.extract_strided_slice %217 {offsets = [0, 96], sizes = [2, 32], strides = [1, 1]} : vector<2x128xf32> to vector<2x32xf32>
    %233 = arith.negf %232 : vector<2x32xf32>
    %234 = math.exp %233 : vector<2x32xf32>
    %cst_49 = arith.constant 1.000000e+00 : f32
    %235 = vector.broadcast %cst_49 : f32 to vector<2x32xf32>
    %236 = arith.addf %235, %234 : vector<2x32xf32>
    %237 = arith.divf %235, %236 : vector<2x32xf32>
    %238 = arith.mulf %229, %210 : vector<2x32xf32>
    %239 = arith.mulf %223, %231 : vector<2x32xf32>
    %240 = arith.addf %238, %239 : vector<2x32xf32>
    %241 = math.tanh %240 : vector<2x32xf32>
    %242 = arith.mulf %237, %241 : vector<2x32xf32>
    %c8_i32 = arith.constant 8 : i32
    %c0_50 = arith.constant 0 : index
    %c0_51 = arith.constant 0 : index
    %243 = vector.load %arg2[%c0_50, %c0_51] : memref<32x4xf32, #tpu.memory_space<vmem>>, vector<32x4xf32>
    %cst_52 = arith.constant dense<0.000000e+00> : vector<2x4xf32>
    %244 = tpu.matmul %242, %243, %cst_52 {dimension_numbers = #tpu.dot_dimension_numbers<[1], [0], [0], [1], [0, 0, 1, 1], [], []>} : vector<2x32xf32>, vector<32x4xf32>, vector<2x4xf32> -> vector<2x4xf32>
    %c0_53 = arith.constant 0 : index
    %c0_54 = arith.constant 0 : index
    %245 = vector.load %arg3[%c0_53, %c0_54] : memref<1x4xf32, #tpu.memory_space<vmem>>, vector<1x4xf32>
    %246 = vector.broadcast %245 : vector<1x4xf32> to vector<2x4xf32>
    %247 = arith.addf %244, %246 : vector<2x4xf32>
    %c0_55 = arith.constant 0 : index
    %c0_56 = arith.constant 0 : index
    %248 = vector.load %arg4[%c0_55, %c0_56] : memref<2x4xf32, #tpu.memory_space<vmem>>, vector<2x4xf32>
    tpu.vector_store %arg4[%c0_55, %c0_56], %247 {strides = array<i32>} : memref<2x4xf32, #tpu.memory_space<vmem>>, vector<2x4xf32>,
    return
  }
}

</mosaic_0001>

<bundles_post_ra>
// kernel: tpu_custom_call.1
= control target key start
LH: loop header
LB: loop body
LE: loop exit
PB: predicated region body
PF: predicated region fallthrough
CT: control target
= control target key end

     0   :  { %9 = vsyncpa [#allocation3], 0  ;;  %s853_s0 = inlined_call_operand.hbm [shape: f32[8,2,128], index: 0, kind: input, shape index: {}]   ;;  %s854_s1 = inlined_call_operand.vmem [shape: f32[32,128], index: 1, kind: input, shape index: {}]   ;;  %s855_s2 = inlined_call_operand.vmem [shape: f32[32,4], index: 2, kind: input, shape index: {}]   ;;  %s856_s3 = inlined_call_operand.vmem [shape: f32[1,4], index: 3, kind: input, shape index: {}]   ;;  %s857_s4 = inlined_call_operand.hbm [shape: f32[2,4], index: 4, kind: output, shape index: {}]  }
   0x1   :  { %10 = vsyncpa [#allocation4], 0  ;;  %s15_s17 = sshll.u32 %s853_s0, 4  ;;  %s747_s18 = smov [#allocation2]   ;;  %s16_s17 = int_to_ptr.hbm [resolvable:$true] %s15_s17 }
   0x2   :  { %s17_s19 = sshll.u32 %s747_s18, 4  ;;  %s748_s20 = smov 32   ;;  %s18_s19 = int_to_ptr.vmem [resolvable:$true] %s17_s19 }
   0x3   :  { %s749_s21 = smov 2  }
   0x4   :  { %23 = dma.hbm_to_vmem [thread:$0]  %s16_s17, 256, %s18_s19, [#allocation3], %s748_s20, %s748_s20, %s749_s21  }
   0x5   :  { %743 = dma.done.wait [#allocation3], 256  }
   0x6   :  { %744 = vsyncadd [#allocation3], 4294967040  ;;  %v37_v0 = vld [vmem:[%s854_s1 + $0x18] sm:$0xff]  ;;  %v36_v1 = vld [vmem:[%s854_s1 + $0x10] sm:$0xff]  ;;  %v750_v4 = vmov 0.0   ;;  %vm39_vm4 = vcmask 261120  }
   0x7   :  { %55 = vmatpush.msra.mxu0 %v37_v0  ;;  %120 = vmatpush.msra.mxu1 %v37_v0  ;;  %v35_v2 = vld [vmem:[%s854_s1 + $0x8] sm:$0xff]  ;;  %v34_v3 = vld [vmem:[%s854_s1] sm:$0xff]  ;;  %s751_s1 = smov 64   ;;  %s752_s13 = smov [#allocation5]  }
   0x8   :  { %185 = vmatpush.msra.mxu2 %v37_v0  ;;  %250 = vmatpush.msra.mxu3 %v37_v0  ;;  %v38_v5 = vld [vmem:[#allocation2] sm:$0x3]  ;;  %v102_v31 = vld [vmem:[#allocation2 + $0x2] sm:$0x3]  ;;  %v167_v57 = vld [vmem:[#allocation2 + $0x4] sm:$0x3] }
   0x9   :  { %56 = vmatpush.msra.mxu0 %v36_v1  ;;  %121 = vmatpush.msra.mxu1 %v36_v1  ;;  %s596_s14 = sshll.u32 %s752_s13, 4  ;;  %s598_s17 = sshll.u32 %s857_s4, 4  ;;  %s597_s14 = int_to_ptr.vmem [resolvable:$true] %s596_s14  ;;  %s599_s17 = int_to_ptr.hbm [resolvable:$true] %s598_s17 }
   0xa   :  { %186 = vmatpush.msra.mxu2 %v36_v1  ;;  %251 = vmatpush.msra.mxu3 %v36_v1 }
   0xb   :  { %57 = vmatpush.msra.mxu0 %v35_v2  ;;  %122 = vmatpush.msra.mxu1 %v35_v2 }
   0xc   :  { %187 = vmatpush.msra.mxu2 %v35_v2  ;;  %252 = vmatpush.msra.mxu3 %v35_v2 }
   0xd   :  { %58 = vmatpush.msra.mxu0 %v34_v3  ;;  %123 = vmatpush.msra.mxu1 %v34_v3 }
   0xe   :  { %59 = vmatmul.f32.vlgmr.msra.gmra.mxu0 %v750_v4  ;;  %188 = vmatpush.msra.mxu2 %v34_v3 }
   0xf   :  { %253 = vmatpush.msra.mxu3 %v34_v3  ;;  %315 = vmatpush.msrb.mxu0 %v37_v0 }
  0x10   :  { %380 = vmatpush.msrb.mxu1 %v37_v0  ;;  %445 = vmatpush.msrb.mxu2 %v37_v0 }
  0x11   :  { %316 = vmatpush.msrb.mxu0 %v36_v1  ;;  %510 = vmatpush.msrb.mxu3 %v37_v0 }
  0x12   :  { %381 = vmatpush.msrb.mxu1 %v36_v1  ;;  %446 = vmatpush.msrb.mxu2 %v36_v1 }
  0x13   :  { %317 = vmatpush.msrb.mxu0 %v35_v2  ;;  %511 = vmatpush.msrb.mxu3 %v36_v1 }
  0x14   :  { %382 = vmatpush.msrb.mxu1 %v35_v2  ;;  %447 = vmatpush.msrb.mxu2 %v35_v2 }
  0x15   :  { %318 = vmatpush.msrb.mxu0 %v34_v3  ;;  %512 = vmatpush.msrb.mxu3 %v35_v2 }
  0x16   :  { %383 = vmatpush.msrb.mxu1 %v34_v3  ;;  %448 = vmatpush.msrb.mxu2 %v34_v3 }
  0x17   :  { %513 = vmatpush.msrb.mxu3 %v34_v3 }
  0x8b   :  { %v60_v6 = vpop.f32.mrf.mxu0 }
  0x8c   :  { %v63_v7 = vadd.f32 %v60_v6, %v38_v5 }
  0x8e   :  { %631 = vtanh.f32 %v63_v7  ;;  %v608_v9 = vmul.f32 -1.442695, %v63_v7 }
  0x90   :  { %633 = vpow2.f32 %v608_v9 }
  0x94   :  { %v632_v8 = vpop.eup %631 }
  0x95   :  { %86 = vrot.lane.b32.xlu0 %v632_v8, %s751_s1 }
  0x96   :  { %v634_v10 = vpop.eup %633 }
  0x97   :  { %v67_v11 = vadd.f32 1.0, %v634_v10 }
  0x99   :  { %635 = vrcp.f32 %v67_v11  ;;  %v79_v17 = vand.u32 2147483648, %v67_v11  ;;  %vm73_vm1 = vweird.f32 %v67_v11  ;;  %v77_v18 = vand.u32 2147483647, %v67_v11 }
  0x9b   :  { %v80_v20 = vor.u32 1.1754944e-38, %v79_v17  ;;  %vm78_vm3 = vcmp.eq.f32.partialorder %v77_v18, 8.507059e+37 }
  0x9f   :  { %v636_v12 = vpop.eup %635 }
  0xa0   :  { %v69_v13 = vmul.f32 %v636_v12, %v67_v11  ;;  %vm74_vm0 = vweird.f32 %v636_v12 }
  0xa1   :  { %vm75_vm2 = vmor %vm73_vm1, %vm74_vm0 }
  0xa2   :  { %v70_v14 = vsub.f32 1.0, %v69_v13 }
  0xa4   :  { %v71_v15 = vmul.f32 %v636_v12, %v70_v14 }
  0xa6   :  { %v72_v16 = vadd.f32 %v636_v12, %v71_v15 }
  0xa8   :  { %v76_v19 = vsel %vm75_vm2, %v636_v12, %v72_v16 }
  0xa9   :  { %v81_v22 = vsel %vm78_vm3, %v80_v20, %v76_v19  ;;  %v232_v19 = vld [vmem:[#allocation2 + $0x6] sm:$0x3] }
  0xaa   :  { %v84_v24 = vmul.f32 0.0, %v81_v22 }
 0x107   :  { %v87_v21 = vpop.permute.xlu0 %86 }
 0x108   :  { %v89_v23 = vmul.f32 %v87_v21, %v81_v22 }
 0x10a   :  { %91 = vrot.lane.b32.xlu0 %v89_v23, %s748_s20 }
 0x17c   :  { %v92_v25 = vpop.permute.xlu0 %91 }
 0x17d   :  { %v94_v26 = vadd.f32 %v92_v25, %v84_v24 }
 0x17f   :  { %637 = vtanh.f32 %v94_v26 }
 0x185   :  { %v638_v27 = vpop.eup %637 }
 0x186   :  { %97 = vrot.lane.b32.xlu1 %v638_v27, %s751_s1 }
 0x1f8   :  { %v98_v28 = vpop.permute.xlu1 %97 }
 0x1f9   :  { %v100_v29 = vmul.f32 %v98_v28, %v81_v22 }
 0x1fb   :  { %104 = vrot.lane.b32.xlu1 %v100_v29, %s748_s20 }
 0x26d   :  { %v105_v30 = vpop.permute.xlu1 %104 }
 0x26e   :  { %609 = vmatmul.msk.f32.vlgmr.msra.gmra.mxu1 %vm39_vm4, %v105_v30 }
 0x2eb   :  { %v125_v32 = vpop.f32.mrf.mxu1 }
 0x2ec   :  { %v128_v33 = vadd.f32 %v125_v32, %v102_v31 }
 0x2ee   :  { %639 = vtanh.f32 %v128_v33  ;;  %v610_v35 = vmul.f32 -1.442695, %v128_v33 }
 0x2f0   :  { %641 = vpow2.f32 %v610_v35 }
 0x2f4   :  { %v640_v34 = vpop.eup %639 }
 0x2f5   :  { %151 = vrot.lane.b32.xlu2 %v640_v34, %s751_s1 }
 0x2f6   :  { %v642_v36 = vpop.eup %641 }
 0x2f7   :  { %v132_v37 = vadd.f32 1.0, %v642_v36 }
 0x2f9   :  { %643 = vrcp.f32 %v132_v37  ;;  %v144_v43 = vand.u32 2147483648, %v132_v37  ;;  %vm138_vm6 = vweird.f32 %v132_v37  ;;  %v142_v44 = vand.u32 2147483647, %v132_v37 }
 0x2fb   :  { %v145_v46 = vor.u32 1.1754944e-38, %v144_v43  ;;  %vm143_vm8 = vcmp.eq.f32.partialorder %v142_v44, 8.507059e+37 }
 0x2ff   :  { %v644_v38 = vpop.eup %643 }
 0x300   :  { %v134_v39 = vmul.f32 %v644_v38, %v132_v37  ;;  %vm139_vm5 = vweird.f32 %v644_v38 }
 0x301   :  { %vm140_vm7 = vmor %vm138_vm6, %vm139_vm5 }
 0x302   :  { %v135_v40 = vsub.f32 1.0, %v134_v39 }
 0x304   :  { %v136_v41 = vmul.f32 %v644_v38, %v135_v40 }
 0x306   :  { %v137_v42 = vadd.f32 %v644_v38, %v136_v41 }
 0x308   :  { %v141_v45 = vsel %vm140_vm7, %v644_v38, %v137_v42 }
 0x309   :  { %v146_v48 = vsel %vm143_vm8, %v145_v46, %v141_v45  ;;  %v297_v45 = vld [vmem:[#allocation2 + $0x8] sm:$0x3] }
 0x30a   :  { %v149_v50 = vmul.f32 %v146_v48, %v94_v26 }
 0x34f   :  { %v152_v47 = vpop.permute.xlu2 %151 }
 0x350   :  { %v154_v49 = vmul.f32 %v152_v47, %v146_v48 }
 0x352   :  { %156 = vrot.lane.b32.xlu2 %v154_v49, %s748_s20 }
 0x3ac   :  { %v157_v51 = vpop.permute.xlu2 %156 }
 0x3ad   :  { %v159_v52 = vadd.f32 %v157_v51, %v149_v50 }
 0x3af   :  { %645 = vtanh.f32 %v159_v52 }
 0x3b5   :  { %v646_v53 = vpop.eup %645 }
 0x3b6   :  { %162 = vrot.lane.b32.xlu0 %v646_v53, %s751_s1 }
 0x428   :  { %v163_v54 = vpop.permute.xlu0 %162 }
 0x429   :  { %v165_v55 = vmul.f32 %v163_v54, %v146_v48 }
 0x42b   :  { %169 = vrot.lane.b32.xlu1 %v165_v55, %s748_s20 }
 0x49d   :  { %v170_v56 = vpop.permute.xlu1 %169 }
 0x49e   :  { %611 = vmatmul.msk.f32.vlgmr.msra.gmra.mxu2 %vm39_vm4, %v170_v56 }
 0x521   :  { %v190_v58 = vpop.f32.mrf.mxu2 }
 0x522   :  { %v193_v59 = vadd.f32 %v190_v58, %v167_v57 }
 0x524   :  { %647 = vtanh.f32 %v193_v59  ;;  %v612_v61 = vmul.f32 -1.442695, %v193_v59 }
 0x526   :  { %649 = vpow2.f32 %v612_v61 }
 0x52a   :  { %v648_v60 = vpop.eup %647 }
 0x52b   :  { %216 = vrot.lane.b32.xlu2 %v648_v60, %s751_s1 }
 0x52c   :  { %v650_v62 = vpop.eup %649 }
 0x52d   :  { %v197_v63 = vadd.f32 1.0, %v650_v62 }
 0x52f   :  { %651 = vrcp.f32 %v197_v63  ;;  %v209_v5 = vand.u32 2147483648, %v197_v63  ;;  %vm203_vm10 = vweird.f32 %v197_v63  ;;  %v207_v6 = vand.u32 2147483647, %v197_v63 }
 0x531   :  { %v210_v8 = vor.u32 1.1754944e-38, %v209_v5  ;;  %vm208_vm12 = vcmp.eq.f32.partialorder %v207_v6, 8.507059e+37 }
 0x535   :  { %v652_v0 = vpop.eup %651 }
 0x536   :  { %v199_v1 = vmul.f32 %v652_v0, %v197_v63  ;;  %vm204_vm9 = vweird.f32 %v652_v0 }
 0x537   :  { %vm205_vm11 = vmor %vm203_vm10, %vm204_vm9 }
 0x538   :  { %v200_v2 = vsub.f32 1.0, %v199_v1 }
 0x53a   :  { %v201_v3 = vmul.f32 %v652_v0, %v200_v2 }
 0x53c   :  { %v202_v4 = vadd.f32 %v652_v0, %v201_v3 }
 0x53e   :  { %v206_v7 = vsel %vm205_vm11, %v652_v0, %v202_v4 }
 0x53f   :  { %v211_v10 = vsel %vm208_vm12, %v210_v8, %v206_v7  ;;  %v362_v7 = vld [vmem:[#allocation2 + $0xa] sm:$0x3] }
 0x540   :  { %v214_v12 = vmul.f32 %v211_v10, %v159_v52 }
 0x585   :  { %v217_v9 = vpop.permute.xlu2 %216 }
 0x586   :  { %v219_v11 = vmul.f32 %v217_v9, %v211_v10 }
 0x588   :  { %221 = vrot.lane.b32.xlu0 %v219_v11, %s748_s20 }
 0x5fa   :  { %v222_v13 = vpop.permute.xlu0 %221 }
 0x5fb   :  { %v224_v14 = vadd.f32 %v222_v13, %v214_v12 }
 0x5fd   :  { %653 = vtanh.f32 %v224_v14 }
 0x603   :  { %v654_v15 = vpop.eup %653 }
 0x604   :  { %227 = vrot.lane.b32.xlu1 %v654_v15, %s751_s1 }
 0x676   :  { %v228_v16 = vpop.permute.xlu1 %227 }
 0x677   :  { %v230_v17 = vmul.f32 %v228_v16, %v211_v10 }
 0x679   :  { %234 = vrot.lane.b32.xlu2 %v230_v17, %s748_s20 }
 0x6d3   :  { %v235_v18 = vpop.permute.xlu2 %234 }
 0x6d4   :  { %613 = vmatmul.msk.f32.vlgmr.msra.gmra.mxu3 %vm39_vm4, %v235_v18 }
 0x757   :  { %v255_v20 = vpop.f32.mrf.mxu3 }
 0x758   :  { %v258_v21 = vadd.f32 %v255_v20, %v232_v19 }
 0x75a   :  { %655 = vtanh.f32 %v258_v21  ;;  %v614_v23 = vmul.f32 -1.442695, %v258_v21 }
 0x75c   :  { %657 = vpow2.f32 %v614_v23 }
 0x760   :  { %v656_v22 = vpop.eup %655 }
 0x761   :  { %281 = vrot.lane.b32.xlu0 %v656_v22, %s751_s1 }
 0x762   :  { %v658_v24 = vpop.eup %657 }
 0x763   :  { %v262_v25 = vadd.f32 1.0, %v658_v24 }
 0x765   :  { %659 = vrcp.f32 %v262_v25  ;;  %v274_v31 = vand.u32 2147483648, %v262_v25  ;;  %vm268_vm14 = vweird.f32 %v262_v25  ;;  %v272_v32 = vand.u32 2147483647, %v262_v25 }
 0x767   :  { %v275_v34 = vor.u32 1.1754944e-38, %v274_v31  ;;  %vm273_vm0 = vcmp.eq.f32.partialorder %v272_v32, 8.507059e+37 }
 0x76b   :  { %v660_v26 = vpop.eup %659 }
 0x76c   :  { %v264_v27 = vmul.f32 %v660_v26, %v262_v25  ;;  %vm269_vm13 = vweird.f32 %v660_v26 }
 0x76d   :  { %vm270_vm15 = vmor %vm268_vm14, %vm269_vm13 }
 0x76e   :  { %v265_v28 = vsub.f32 1.0, %v264_v27 }
 0x770   :  { %v266_v29 = vmul.f32 %v660_v26, %v265_v28 }
 0x772   :  { %v267_v30 = vadd.f32 %v660_v26, %v266_v29 }
 0x774   :  { %v271_v33 = vsel %vm270_vm15, %v660_v26, %v267_v30 }
 0x775   :  { %v276_v36 = vsel %vm273_vm0, %v275_v34, %v271_v33  ;;  %v427_v33 = vld [vmem:[#allocation2 + $0xc] sm:$0x3] }
 0x776   :  { %v279_v38 = vmul.f32 %v276_v36, %v224_v14 }
 0x7d3   :  { %v282_v35 = vpop.permute.xlu0 %281 }
 0x7d4   :  { %v284_v37 = vmul.f32 %v282_v35, %v276_v36 }
 0x7d6   :  { %286 = vrot.lane.b32.xlu1 %v284_v37, %s748_s20 }
 0x848   :  { %v287_v39 = vpop.permute.xlu1 %286 }
 0x849   :  { %v289_v40 = vadd.f32 %v287_v39, %v279_v38 }
 0x84b   :  { %661 = vtanh.f32 %v289_v40 }
 0x851   :  { %v662_v41 = vpop.eup %661 }
 0x852   :  { %292 = vrot.lane.b32.xlu2 %v662_v41, %s751_s1 }
 0x8ac   :  { %v293_v42 = vpop.permute.xlu2 %292 }
 0x8ad   :  { %v295_v43 = vmul.f32 %v293_v42, %v276_v36 }
 0x8af   :  { %299 = vrot.lane.b32.xlu0 %v295_v43, %s748_s20 }
 0x921   :  { %v300_v44 = vpop.permute.xlu0 %299 }
 0x922   :  { %615 = vmatmul.msk.f32.vlgmr.msrb.gmra.mxu0 %vm39_vm4, %v300_v44 }
 0x99f   :  { %v320_v46 = vpop.f32.mrf.mxu0 }
 0x9a0   :  { %v323_v47 = vadd.f32 %v320_v46, %v297_v45 }
 0x9a2   :  { %663 = vtanh.f32 %v323_v47  ;;  %v616_v49 = vmul.f32 -1.442695, %v323_v47 }
 0x9a4   :  { %665 = vpow2.f32 %v616_v49 }
 0x9a8   :  { %v664_v48 = vpop.eup %663 }
 0x9a9   :  { %346 = vrot.lane.b32.xlu1 %v664_v48, %s751_s1 }
 0x9aa   :  { %v666_v50 = vpop.eup %665 }
 0x9ab   :  { %v327_v51 = vadd.f32 1.0, %v666_v50 }
 0x9ad   :  { %667 = vrcp.f32 %v327_v51  ;;  %v339_v57 = vand.u32 2147483648, %v327_v51  ;;  %vm333_vm2 = vweird.f32 %v327_v51  ;;  %v337_v58 = vand.u32 2147483647, %v327_v51 }
 0x9af   :  { %v340_v60 = vor.u32 1.1754944e-38, %v339_v57  ;;  %vm338_vm5 = vcmp.eq.f32.partialorder %v337_v58, 8.507059e+37 }
 0x9b3   :  { %v668_v52 = vpop.eup %667 }
 0x9b4   :  { %v329_v53 = vmul.f32 %v668_v52, %v327_v51  ;;  %vm334_vm1 = vweird.f32 %v668_v52 }
 0x9b5   :  { %vm335_vm3 = vmor %vm333_vm2, %vm334_vm1  ;;  %vm589_vm2 = vcmask 25600  }
 0x9b6   :  { %v330_v54 = vsub.f32 1.0, %v329_v53 }
 0x9b8   :  { %v331_v55 = vmul.f32 %v668_v52, %v330_v54 }
 0x9ba   :  { %v332_v56 = vadd.f32 %v668_v52, %v331_v55 }
 0x9bc   :  { %v336_v59 = vsel %vm335_vm3, %v668_v52, %v332_v56 }
 0x9bd   :  { %v341_v62 = vsel %vm338_vm5, %v340_v60, %v336_v59  ;;  %v492_v59 = vld [vmem:[#allocation2 + $0xe] sm:$0x3] }
 0x9be   :  { %v344_v0 = vmul.f32 %v341_v62, %v289_v40 }
 0xa1b   :  { %v347_v61 = vpop.permute.xlu1 %346 }
 0xa1c   :  { %v349_v63 = vmul.f32 %v347_v61, %v341_v62 }
 0xa1e   :  { %351 = vrot.lane.b32.xlu2 %v349_v63, %s748_s20 }
 0xa78   :  { %v352_v1 = vpop.permute.xlu2 %351 }
 0xa79   :  { %v354_v2 = vadd.f32 %v352_v1, %v344_v0 }
 0xa7b   :  { %669 = vtanh.f32 %v354_v2 }
 0xa81   :  { %v670_v3 = vpop.eup %669 }
 0xa82   :  { %357 = vrot.lane.b32.xlu0 %v670_v3, %s751_s1 }
 0xaf4   :  { %v358_v4 = vpop.permute.xlu0 %357 }
 0xaf5   :  { %v360_v5 = vmul.f32 %v358_v4, %v341_v62 }
 0xaf7   :  { %364 = vrot.lane.b32.xlu1 %v360_v5, %s748_s20 }
 0xb69   :  { %v365_v6 = vpop.permute.xlu1 %364 }
 0xb6a   :  { %617 = vmatmul.msk.f32.vlgmr.msrb.gmra.mxu1 %vm39_vm4, %v365_v6 }
 0xbe7   :  { %v385_v8 = vpop.f32.mrf.mxu1 }
 0xbe8   :  { %v388_v9 = vadd.f32 %v385_v8, %v362_v7 }
 0xbea   :  { %671 = vtanh.f32 %v388_v9  ;;  %v618_v11 = vmul.f32 -1.442695, %v388_v9 }
 0xbec   :  { %673 = vpow2.f32 %v618_v11 }
 0xbf0   :  { %v672_v10 = vpop.eup %671 }
 0xbf1   :  { %411 = vrot.lane.b32.xlu2 %v672_v10, %s751_s1 }
 0xbf2   :  { %v674_v12 = vpop.eup %673 }
 0xbf3   :  { %v392_v13 = vadd.f32 1.0, %v674_v12 }
 0xbf5   :  { %675 = vrcp.f32 %v392_v13  ;;  %v404_v19 = vand.u32 2147483648, %v392_v13  ;;  %vm398_vm7 = vweird.f32 %v392_v13  ;;  %v402_v20 = vand.u32 2147483647, %v392_v13 }
 0xbf7   :  { %v405_v22 = vor.u32 1.1754944e-38, %v404_v19  ;;  %vm403_vm9 = vcmp.eq.f32.partialorder %v402_v20, 8.507059e+37  ;;  %v558_v19 = vld [vmem:[%s855_s2 + $0x10] sm:$0xff]  ;;  %v557_v20 = vld [vmem:[%s855_s2 + $0x8] sm:$0xff] }
 0xbfb   :  { %v676_v14 = vpop.eup %675 }
 0xbfc   :  { %v394_v15 = vmul.f32 %v676_v14, %v392_v13  ;;  %vm399_vm6 = vweird.f32 %v676_v14 }
 0xbfd   :  { %vm400_vm8 = vmor %vm398_vm7, %vm399_vm6 }
 0xbfe   :  { %v395_v16 = vsub.f32 1.0, %v394_v15 }
 0xc00   :  { %v396_v17 = vmul.f32 %v676_v14, %v395_v16 }
 0xc02   :  { %v397_v18 = vadd.f32 %v676_v14, %v396_v17 }
 0xc04   :  { %v401_v21 = vsel %vm400_vm8, %v676_v14, %v397_v18  ;;  %v559_v18 = vld [vmem:[%s855_s2 + $0x18] sm:$0xff] }
 0xc05   :  { %v406_v24 = vsel %vm403_vm9, %v405_v22, %v401_v21  ;;  %581 = vmatpush.msra.mxu0 %v559_v18  ;;  %v556_v21 = vld [vmem:[%s855_s2] sm:$0xff] }
 0xc06   :  { %v409_v26 = vmul.f32 %v406_v24, %v354_v2 }
 0xc07   :  { %582 = vmatpush.msra.mxu0 %v558_v19 }
 0xc09   :  { %583 = vmatpush.msra.mxu0 %v557_v20 }
 0xc0b   :  { %584 = vmatpush.msra.mxu0 %v556_v21 }
 0xc4b   :  { %v412_v23 = vpop.permute.xlu2 %411 }
 0xc4c   :  { %v414_v25 = vmul.f32 %v412_v23, %v406_v24 }
 0xc4e   :  { %416 = vrot.lane.b32.xlu0 %v414_v25, %s748_s20  ;;  %v630_v25 = vld [vmem:[%s856_s3] ss:$0 sm:$0xff] }
 0xcc0   :  { %v417_v27 = vpop.permute.xlu0 %416 }
 0xcc1   :  { %v419_v28 = vadd.f32 %v417_v27, %v409_v26 }
 0xcc3   :  { %677 = vtanh.f32 %v419_v28 }
 0xcc9   :  { %v678_v29 = vpop.eup %677 }
 0xcca   :  { %422 = vrot.lane.b32.xlu1 %v678_v29, %s751_s1 }
 0xd3c   :  { %v423_v30 = vpop.permute.xlu1 %422 }
 0xd3d   :  { %v425_v31 = vmul.f32 %v423_v30, %v406_v24 }
 0xd3f   :  { %429 = vrot.lane.b32.xlu2 %v425_v31, %s748_s20 }
 0xd99   :  { %v430_v32 = vpop.permute.xlu2 %429 }
 0xd9a   :  { %619 = vmatmul.msk.f32.vlgmr.msrb.gmra.mxu2 %vm39_vm4, %v430_v32 }
 0xe1d   :  { %v450_v34 = vpop.f32.mrf.mxu2 }
 0xe1e   :  { %v453_v35 = vadd.f32 %v450_v34, %v427_v33 }
 0xe20   :  { %679 = vtanh.f32 %v453_v35  ;;  %v620_v37 = vmul.f32 -1.442695, %v453_v35 }
 0xe22   :  { %681 = vpow2.f32 %v620_v37 }
 0xe26   :  { %v680_v36 = vpop.eup %679 }
 0xe27   :  { %476 = vrot.lane.b32.xlu0 %v680_v36, %s751_s1 }
 0xe28   :  { %v682_v38 = vpop.eup %681 }
 0xe29   :  { %v457_v39 = vadd.f32 1.0, %v682_v38 }
 0xe2b   :  { %683 = vrcp.f32 %v457_v39  ;;  %v469_v45 = vand.u32 2147483648, %v457_v39  ;;  %vm463_vm11 = vweird.f32 %v457_v39  ;;  %v467_v46 = vand.u32 2147483647, %v457_v39 }
 0xe2d   :  { %v470_v48 = vor.u32 1.1754944e-38, %v469_v45  ;;  %vm468_vm13 = vcmp.eq.f32.partialorder %v467_v46, 8.507059e+37 }
 0xe31   :  { %v684_v40 = vpop.eup %683 }
 0xe32   :  { %v459_v41 = vmul.f32 %v684_v40, %v457_v39  ;;  %vm464_vm10 = vweird.f32 %v684_v40 }
 0xe33   :  { %vm465_vm12 = vmor %vm463_vm11, %vm464_vm10 }
 0xe34   :  { %v460_v42 = vsub.f32 1.0, %v459_v41 }
 0xe36   :  { %v461_v43 = vmul.f32 %v684_v40, %v460_v42 }
 0xe38   :  { %v462_v44 = vadd.f32 %v684_v40, %v461_v43 }
 0xe3a   :  { %v466_v47 = vsel %vm465_vm12, %v684_v40, %v462_v44 }
 0xe3b   :  { %v471_v50 = vsel %vm468_vm13, %v470_v48, %v466_v47 }
 0xe3c   :  { %v474_v52 = vmul.f32 %v471_v50, %v419_v28 }
 0xe99   :  { %v477_v49 = vpop.permute.xlu0 %476 }
 0xe9a   :  { %v479_v51 = vmul.f32 %v477_v49, %v471_v50 }
 0xe9c   :  { %481 = vrot.lane.b32.xlu1 %v479_v51, %s748_s20 }
 0xf0e   :  { %v482_v53 = vpop.permute.xlu1 %481 }
 0xf0f   :  { %v484_v54 = vadd.f32 %v482_v53, %v474_v52 }
 0xf11   :  { %685 = vtanh.f32 %v484_v54 }
 0xf17   :  { %v686_v55 = vpop.eup %685 }
 0xf18   :  { %487 = vrot.lane.b32.xlu2 %v686_v55, %s751_s1 }
 0xf72   :  { %v488_v56 = vpop.permute.xlu2 %487 }
 0xf73   :  { %v490_v57 = vmul.f32 %v488_v56, %v471_v50 }
 0xf75   :  { %494 = vrot.lane.b32.xlu0 %v490_v57, %s748_s20 }
 0xfe7   :  { %v495_v58 = vpop.permute.xlu0 %494 }
 0xfe8   :  { %621 = vmatmul.msk.f32.vlgmr.msrb.gmra.mxu3 %vm39_vm4, %v495_v58 }
0x106b   :  { %v515_v60 = vpop.f32.mrf.mxu3 }
0x106c   :  { %v518_v61 = vadd.f32 %v515_v60, %v492_v59 }
0x106e   :  { %687 = vtanh.f32 %v518_v61  ;;  %v622_v63 = vmul.f32 -1.442695, %v518_v61 }
0x1070   :  { %689 = vpow2.f32 %v622_v63 }
0x1074   :  { %v688_v62 = vpop.eup %687 }
0x1075   :  { %541 = vrot.lane.b32.xlu1 %v688_v62, %s751_s1 }
0x1076   :  { %v690_v0 = vpop.eup %689 }
0x1077   :  { %v522_v1 = vadd.f32 1.0, %v690_v0 }
0x1079   :  { %691 = vrcp.f32 %v522_v1  ;;  %v534_v7 = vand.u32 2147483648, %v522_v1  ;;  %vm528_vm15 = vweird.f32 %v522_v1  ;;  %v532_v8 = vand.u32 2147483647, %v522_v1 }
0x107b   :  { %v535_v10 = vor.u32 1.1754944e-38, %v534_v7  ;;  %vm533_vm1 = vcmp.eq.f32.partialorder %v532_v8, 8.507059e+37 }
0x107f   :  { %v692_v2 = vpop.eup %691 }
0x1080   :  { %v524_v3 = vmul.f32 %v692_v2, %v522_v1  ;;  %vm529_vm14 = vweird.f32 %v692_v2 }
0x1081   :  { %vm530_vm0 = vmor %vm528_vm15, %vm529_vm14 }
0x1082   :  { %v525_v4 = vsub.f32 1.0, %v524_v3 }
0x1084   :  { %v526_v5 = vmul.f32 %v692_v2, %v525_v4 }
0x1086   :  { %v527_v6 = vadd.f32 %v692_v2, %v526_v5 }
0x1088   :  { %v531_v9 = vsel %vm530_vm0, %v692_v2, %v527_v6 }
0x1089   :  { %v536_v12 = vsel %vm533_vm1, %v535_v10, %v531_v9 }
0x108a   :  { %v539_v14 = vmul.f32 %v536_v12, %v484_v54 }
0x10e7   :  { %v542_v11 = vpop.permute.xlu1 %541 }
0x10e8   :  { %v544_v13 = vmul.f32 %v542_v11, %v536_v12 }
0x10ea   :  { %546 = vrot.lane.b32.xlu2 %v544_v13, %s748_s20 }
0x1144   :  { %v547_v15 = vpop.permute.xlu2 %546 }
0x1145   :  { %v549_v16 = vadd.f32 %v547_v15, %v539_v14 }
0x1147   :  { %693 = vtanh.f32 %v549_v16 }
0x114d   :  { %v694_v17 = vpop.eup %693 }
0x114e   :  { %552 = vrot.lane.b32.xlu0 %v694_v17, %s751_s1 }
0x11c0   :  { %v553_v22 = vpop.permute.xlu0 %552 }
0x11c1   :  { %v555_v23 = vmul.f32 %v553_v22, %v536_v12 }
0x11c3   :  { %565 = vrot.lane.b32.xlu1 %v555_v23, %s748_s20 }
0x1235   :  { %v566_v24 = vpop.permute.xlu1 %565 }
0x1236   :  { %623 = vmatmul.msk.f32.vlgmr.msra.gmra.mxu0 %vm39_vm4, %v566_v24 }
0x12b3   :  { %v586_v26 = vpop.f32.mrf.mxu0 }
0x12b4   :  { %v587_v27 = vadd.f32 %v630_v25, %v586_v26 }
0x12b6   :  { %590 = vst.msk [vmem:[#allocation5] sm:$0x3] %vm589_vm2, %v587_v27 }
0x12b7   :  { %601 = dma.vmem_to_hbm [thread:$0]  %s597_s14, 32, %s599_s17, [#allocation4]  }
0x12b8   :  { %745 = dma.done.wait [#allocation4], 32  }
0x12b9   :  { %746 = vsyncadd [#allocation4], 4294967264 }
0x12ba   :  { %606 = vsyncpa [#allocation3], 1 }
0x12bb   :  { %607 = vsyncpa [#allocation4], 1 }

</bundles_post_ra>
